<compile_context>
chip_gen: v5e
topology: v5e:2x2
jax: 0.10.0
libtpu: 0.0.40
codegen_flags: <defaults>
</compile_context>

<pallas_src>
import functools

import jax
import jax.numpy as jnp
from jax.experimental import pallas as pl
from jax.experimental.pallas import tpu as pltpu


# ----------------------------- Pallas kernel --------------------------------

def _routing_fused_kernel(x_ref, wug_ref, bug_ref, wd_ref, bd_ref, o_ref, *, hid):
    # x:   [TM, D]
    # wug: [D, 2*hid]   (up | gate concatenated along N, [in, out] layout)
    # bug: [1, 2*hid]
    # wd:  [hid, Npad]  (down proj, output padded to lane-dense width)
    # bd:  [1, Npad]
    x = x_ref[...]
    ug = jnp.dot(x, wug_ref[...], preferred_element_type=jnp.float32) + bug_ref[...]
    up = ug[:, :hid]          # hid is a multiple of 128 for d_model % 32 == 0
    gate = ug[:, hid:]
    act = (up * jax.nn.sigmoid(up)) * gate            # SiLU(up) * gate
    logits = jnp.dot(act, wd_ref[...], preferred_element_type=jnp.float32) + bd_ref[...]
    o_ref[...] = logits.astype(o_ref.dtype)


# ----------------------------- Wrapper ---------------------------------------

def _pack_params(p, num_heads):
    """Concatenate up|gate weights and pad the down projection to 128 lanes."""
    n_out = num_heads * 2
    n_pad = ((n_out + 127) // 128) * 128
    w_ug = jnp.concatenate([p["w_up"], p["w_gate"]], axis=1)       # [D, 2*hid]
    b_ug = jnp.concatenate([p["b_up"], p["b_gate"]])[None, :]      # [1, 2*hid]
    w_down = jnp.pad(p["w_down"], ((0, 0), (0, n_pad - n_out)))    # [hid, Npad]
    b_down = jnp.pad(p["b_down"], (0, n_pad - n_out))[None, :]     # [1, Npad]
    return w_ug, b_ug, w_down, b_down, n_pad


def routing_network_forward(hidden_states, params, num_heads):
    """Matches RoutingNetwork.forward: returns ([B, H, S, 2] weights, scalar loss)."""
    B, S, D = hidden_states.shape
    hid = D * 4
    M = B * S
    n_out = num_heads * 2

    w_ug, b_ug, w_down, b_down, n_pad = _pack_params(params, num_heads)

    # M tile: multiple of 8 sublanes, capped at 256 rows per grid step.
    TM = min(256, max(8, ((M + 7) // 8) * 8))
    M_pad = ((M + TM - 1) // TM) * TM
    x2d = hidden_states.reshape(M, D)
    if M_pad != M:
        x2d = jnp.pad(x2d, ((0, M_pad - M), (0, 0)))

    logits_pad = pl.pallas_call(
        functools.partial(_routing_fused_kernel, hid=hid),
        grid=(M_pad // TM,),
        out_shape=jax.ShapeDtypeStruct((M_pad, n_pad), hidden_states.dtype),
        in_specs=[
            pl.BlockSpec((TM, D), lambda i: (i, 0)),           # activations: streamed
            pl.BlockSpec((D, 2 * hid), lambda i: (0, 0)),      # weights: VMEM-resident
            pl.BlockSpec((1, 2 * hid), lambda i: (0, 0)),
            pl.BlockSpec((hid, n_pad), lambda i: (0, 0)),
            pl.BlockSpec((1, n_pad), lambda i: (0, 0)),
        ],
        out_specs=pl.BlockSpec((TM, n_pad), lambda i: (i, 0)),  # lane-dense stores
        compiler_params=pltpu.CompilerParams(
            dimension_semantics=("parallel",),
            vmem_limit_bytes=64 * 1024 * 1024,
        ),
    )(x2d, w_ug, b_ug, w_down, b_down)

    # -------- glue: size-2 softmax, entropy, permute (tiny; plain JAX) --------
    logits = logits_pad[:M, :n_out].reshape(B, S, num_heads, 2)
    routing_weights = jax.nn.softmax(logits, axis=-1)
    entropy = -jnp.sum(routing_weights * jnp.log(routing_weights + 1e-9), axis=-1)
    mean_entropy_loss = jnp.mean(entropy)
    return jnp.transpose(routing_weights, (0, 2, 1, 3)), mean_entropy_loss


# ----------------------------- Parameter init --------------------------------

def init_routing_params(key, d_model, num_heads, scale=0.02):
    hid = d_model * 4
    ks = jax.random.split(key, 6)
    return {
        # stored directly in [in_features, out_features] layout
        "w_up":   jax.random.normal(ks[0], (d_model, hid), jnp.float32) * scale,
        "b_up":   jax.random.normal(ks[1], (hid,), jnp.float32) * scale,
        "w_gate": jax.random.normal(ks[2], (d_model, hid), jnp.float32) * scale,
        "b_gate": jax.random.normal(ks[3], (hid,), jnp.float32) * scale,
        "w_down": jax.random.normal(ks[4], (hid, num_heads * 2), jnp.float32) * scale,
        "b_down": jax.random.normal(ks[5], (num_heads * 2,), jnp.float32) * scale,
    }


# ----------------------------- Pure-JAX reference ----------------------------

def routing_network_reference(hidden_states, params, num_heads):
    B, S, _ = hidden_states.shape
    up = hidden_states @ params["w_up"] + params["b_up"]
    gate = hidden_states @ params["w_gate"] + params["b_gate"]
    act = jax.nn.silu(up) * gate
    logits = act @ params["w_down"] + params["b_down"]
    logits = logits.reshape(B, S, num_heads, 2)
    rw = jax.nn.softmax(logits, axis=-1)
    entropy = -jnp.sum(rw * jnp.log(rw + 1e-9), axis=-1)
    return jnp.transpose(rw, (0, 2, 1, 3)), jnp.mean(entropy)


# ----------------------------- Main ------------------------------------------

if __name__ == "__main__":
    d_model, num_heads = 32, 4
    B, S = 2, 8

    root = jax.random.PRNGKey(0)
    k_params, k_x = jax.random.split(root)
    params = init_routing_params(k_params, d_model, num_heads)
    hidden_states = jax.random.normal(k_x, (B, S, d_model), jnp.float32)

    routing_weights, entropy_loss = routing_network_forward(
        hidden_states, params, num_heads)
    jax.block_until_ready((routing_weights, entropy_loss))

    # shape / sanity checks
    assert routing_weights.shape == (B, num_heads, S, 2)
    assert routing_weights.dtype == jnp.float32
    assert jnp.isfinite(routing_weights).all() and jnp.isfinite(entropy_loss)
    assert jnp.allclose(jnp.sum(routing_weights, axis=-1), 1.0, atol=1e-5)

    # numerical check against a pure-JAX reference
    ref_w, ref_e = routing_network_reference(hidden_states, params, num_heads)
    assert jnp.allclose(routing_weights, ref_w, atol=1e-5, rtol=1e-5)
    assert jnp.allclose(entropy_loss, ref_e, atol=1e-5, rtol=1e-5)

    print("KERNEL_OK")
</pallas_src>

<mosaic_0001>
module attributes {stable_mosaic.version = 11 : i64} {
  func.func @_routing_fused_kernel(%arg0: i32, %arg1: memref<16x32xf32, #tpu.memory_space<vmem>>, %arg2: memref<32x256xf32, #tpu.memory_space<vmem>>, %arg3: memref<1x256xf32, #tpu.memory_space<vmem>>, %arg4: memref<128x128xf32, #tpu.memory_space<vmem>>, %arg5: memref<1x128xf32, #tpu.memory_space<vmem>>, %arg6: memref<16x128xf32, #tpu.memory_space<vmem>>) attributes {dimension_semantics = [#tpu.dimension_semantics<parallel>], iteration_bounds = array<i64: 1>, scalar_prefetch = 0 : i64, scratch_operands = 0 : i64, tpu.core_type = #tpu.core_type<tc>, window_params = [{transform_indices = @transform_0, window_bounds = array<i64: 16, 32>}, {pipeline_mode = #tpu.pipeline_mode<synchronous>, transform_indices = @transform_1, window_bounds = array<i64: 32, 256>}, {pipeline_mode = #tpu.pipeline_mode<synchronous>, transform_indices = @transform_2, window_bounds = array<i64: 1, 256>}, {pipeline_mode = #tpu.pipeline_mode<synchronous>, transform_indices = @transform_3, window_bounds = array<i64: 128, 128>}, {pipeline_mode = #tpu.pipeline_mode<synchronous>, transform_indices = @transform_4, window_bounds = array<i64: 1, 128>}, {transform_indices = @transform_5, window_bounds = array<i64: 16, 128>}]} {
    %c0 = arith.constant 0 : index
    %c0_0 = arith.constant 0 : index
    %0 = vector.load %arg1[%c0, %c0_0] : memref<16x32xf32, #tpu.memory_space<vmem>>, vector<16x32xf32>
    %c0_1 = arith.constant 0 : index
    %c0_2 = arith.constant 0 : index
    %1 = vector.load %arg2[%c0_1, %c0_2] : memref<32x256xf32, #tpu.memory_space<vmem>>, vector<32x256xf32>
    %cst = arith.constant dense<0.000000e+00> : vector<16x256xf32>
    %2 = tpu.matmul %0, %1, %cst {dimension_numbers = #tpu.dot_dimension_numbers<[1], [0], [0], [1], [0, 0, 1, 1], [], []>} : vector<16x32xf32>, vector<32x256xf32>, vector<16x256xf32> -> vector<16x256xf32>
    %c0_3 = arith.constant 0 : index
    %c0_4 = arith.constant 0 : index
    %3 = vector.load %arg3[%c0_3, %c0_4] : memref<1x256xf32, #tpu.memory_space<vmem>>, vector<1x256xf32>
    %4 = vector.broadcast %3 : vector<1x256xf32> to vector<16x256xf32>
    %5 = arith.addf %2, %4 : vector<16x256xf32>
    %6 = vector.extract_strided_slice %5 {offsets = [0, 0], sizes = [16, 128], strides = [1, 1]} : vector<16x256xf32> to vector<16x128xf32>
    %7 = vector.extract_strided_slice %5 {offsets = [0, 128], sizes = [16, 128], strides = [1, 1]} : vector<16x256xf32> to vector<16x128xf32>
    %8 = arith.negf %6 : vector<16x128xf32>
    %9 = math.exp %8 : vector<16x128xf32>
    %cst_5 = arith.constant 1.000000e+00 : f32
    %10 = vector.broadcast %cst_5 : f32 to vector<16x128xf32>
    %11 = arith.addf %10, %9 : vector<16x128xf32>
    %12 = arith.divf %10, %11 : vector<16x128xf32>
    %13 = arith.mulf %6, %12 : vector<16x128xf32>
    %14 = arith.mulf %13, %7 : vector<16x128xf32>
    %c0_6 = arith.constant 0 : index
    %c0_7 = arith.constant 0 : index
    %15 = vector.load %arg4[%c0_6, %c0_7] : memref<128x128xf32, #tpu.memory_space<vmem>>, vector<128x128xf32>
    %cst_8 = arith.constant dense<0.000000e+00> : vector<16x128xf32>
    %16 = tpu.matmul %14, %15, %cst_8 {dimension_numbers = #tpu.dot_dimension_numbers<[1], [0], [0], [1], [0, 0, 1, 1], [], []>} : vector<16x128xf32>, vector<128x128xf32>, vector<16x128xf32> -> vector<16x128xf32>
    %c0_9 = arith.constant 0 : index
    %c0_10 = arith.constant 0 : index
    %17 = vector.load %arg5[%c0_9, %c0_10] : memref<1x128xf32, #tpu.memory_space<vmem>>, vector<1x128xf32>
    %18 = vector.broadcast %17 : vector<1x128xf32> to vector<16x128xf32>
    %19 = arith.addf %16, %18 : vector<16x128xf32>
    %c0_11 = arith.constant 0 : index
    %c0_12 = arith.constant 0 : index
    %20 = vector.load %arg6[%c0_11, %c0_12] : memref<16x128xf32, #tpu.memory_space<vmem>>, vector<16x128xf32>
    tpu.vector_store %arg6[%c0_11, %c0_12], %19 {strides = array<i32>} : memref<16x128xf32, #tpu.memory_space<vmem>>, vector<16x128xf32>,
    return
  }
  func.func @transform_0(%arg0: i32) -> (i32, i32) {
    %c0_i32 = arith.constant 0 : i32
    %c0_i32_0 = arith.constant 0 : i32
    return %arg0, %c0_i32 : i32, i32
  }
  func.func @transform_1(%arg0: i32) -> (i32, i32) {
    %c0_i32 = arith.constant 0 : i32
    %c0_i32_0 = arith.constant 0 : i32
    %c0_i32_1 = arith.constant 0 : i32
    return %c0_i32, %c0_i32_0 : i32, i32
  }
  func.func @transform_2(%arg0: i32) -> (i32, i32) {
    %c0_i32 = arith.constant 0 : i32
    %c0_i32_0 = arith.constant 0 : i32
    %c0_i32_1 = arith.constant 0 : i32
    return %c0_i32, %c0_i32_0 : i32, i32
  }
  func.func @transform_3(%arg0: i32) -> (i32, i32) {
    %c0_i32 = arith.constant 0 : i32
    %c0_i32_0 = arith.constant 0 : i32
    %c0_i32_1 = arith.constant 0 : i32
    return %c0_i32, %c0_i32_0 : i32, i32
  }
  func.func @transform_4(%arg0: i32) -> (i32, i32) {
    %c0_i32 = arith.constant 0 : i32
    %c0_i32_0 = arith.constant 0 : i32
    %c0_i32_1 = arith.constant 0 : i32
    return %c0_i32, %c0_i32_0 : i32, i32
  }
  func.func @transform_5(%arg0: i32) -> (i32, i32) {
    %c0_i32 = arith.constant 0 : i32
    %c0_i32_0 = arith.constant 0 : i32
    return %arg0, %c0_i32 : i32, i32
  }
}

</mosaic_0001>

<bundles_post_ra>
// kernel: tpu_custom_call.1
= control target key start
LH: loop header
LB: loop body
LE: loop exit
PB: predicated region body
PF: predicated region fallthrough
CT: control target
= control target key end

     0   :  { %10 = vsyncpa [#allocation3], 0  ;;  %s497_s0 = inlined_call_operand.hbm [shape: f32[16,32], index: 0, kind: input, shape index: {}]   ;;  %s498_s1 = inlined_call_operand.hbm [shape: f32[32,256], index: 1, kind: input, shape index: {}]   ;;  %s499_s2 = inlined_call_operand.hbm [shape: f32[1,256], index: 2, kind: input, shape index: {}]   ;;  %s500_s3 = inlined_call_operand.hbm [shape: f32[128,128], index: 3, kind: input, shape index: {}]   ;;  %s501_s4 = inlined_call_operand.vmem [shape: f32[1,128], index: 4, kind: input, shape index: {}]   ;;  %s502_s5 = inlined_call_operand.hbm [shape: f32[16,128], index: 5, kind: output, shape index: {}]  }
   0x1   :  { %11 = vsyncpa [#allocation6], 0 }
   0x2   :  { %12 = vsyncpa [#allocation9], 0  ;;  %s31_s20 = sshll.u32 %s498_s1, 4  ;;  %s32_s20 = int_to_ptr.hbm [resolvable:$true] %s31_s20 }
   0x3   :  { %13 = vsyncpa [#allocation4], 0  ;;  %s427_s21 = smov [#allocation5]   ;;  %s18_s25 = sshll.u32 %s497_s0, 4  ;;  %s19_s25 = int_to_ptr.hbm [resolvable:$true] %s18_s25 }
   0x4   :  { %s33_s22 = sshll.u32 %s427_s21, 4  ;;  %s428_s26 = smov 256   ;;  %s34_s22 = int_to_ptr.vmem [resolvable:$true] %s33_s22 }
   0x5   :  { %s429_s27 = smov 16   ;;  %s430_s28 = smov [#allocation2]  }
   0x6   :  { %39 = dma.hbm_to_vmem [thread:$0]  %s32_s20, 1024, %s34_s22, [#allocation6], %s428_s26, %s428_s26, %s429_s27  }
   0x7   :  { %s20_s29 = sshll.u32 %s430_s28, 4  ;;  %s431_s30 = smov 128   ;;  %s21_s29 = int_to_ptr.vmem [resolvable:$true] %s20_s29 }
   0x8   :  { %s432_s6 = smov 8   ;;  %s45_s8 = sshll.u32 %s499_s2, 4  ;;  %s46_s8 = int_to_ptr.hbm [resolvable:$true] %s45_s8 }
   0x9   :  { %26 = dma.hbm_to_vmem [thread:$0]  %s19_s25, 256, %s21_s29, [#allocation3], %s431_s30, %s431_s30, %s432_s6  }
   0xa   :  { %s433_s9 = smov [#allocation7]   ;;  %s55_s12 = sshll.u32 %s500_s3, 4  ;;  %s56_s12 = int_to_ptr.hbm [resolvable:$true] %s55_s12 }
   0xb   :  { %s47_s0 = sshll.u32 %s433_s9, 4  ;;  %s434_s13 = smov [#allocation8]   ;;  %s48_s0 = int_to_ptr.vmem [resolvable:$true] %s47_s0 }
   0xc   :  { %50 = dma.hbm_to_vmem [thread:$0]  %s46_s8, 32, %s48_s0, [#allocation6]  }
   0xd   :  { %s57_s14 = sshll.u32 %s434_s13, 4  ;;  %s58_s14 = int_to_ptr.vmem [resolvable:$true] %s57_s14 }
   0xe   :  { %63 = dma.hbm_to_vmem [thread:$0]  %s56_s12, 2048, %s58_s14, [#allocation9], %s431_s30, %s431_s30, %s432_s6  }
   0xf   :  { %419 = dma.done.wait [#allocation3], 256  }
  0x10   :  { %420 = vsyncadd [#allocation3], 4294967040 }
  0x11   :  { %421 = dma.done.wait [#allocation6], 1056  }
  0x12   :  { %422 = vsyncadd [#allocation6], 4294966240 }
  0x13   :  { %423 = dma.done.wait [#allocation9], 2048  }
  0x14   :  { %424 = vsyncadd [#allocation9], 4294965248  ;;  %v90_v0 = vld [vmem:[#allocation5 + $0x30] sm:$0xff]  ;;  %v88_v1 = vld [vmem:[#allocation5 + $0x20] sm:$0xff]  ;;  %vm98_vm0 = vcmask 261120   ;;  %s435_s15 = smov [#allocation10]  }
  0x15   :  { %117 = vmatpush.msra.mxu0 %v90_v0  ;;  %v86_v2 = vld [vmem:[#allocation5 + $0x10] sm:$0xff]  ;;  %v91_v3 = vld [vmem:[#allocation5 + $0x38] sm:$0xff]  ;;  %v89_v4 = vld [vmem:[#allocation5 + $0x28] sm:$0xff]  ;;  %s242_s16 = sshll.u32 %s435_s15, 4  ;;  %s244_s19 = sshll.u32 %s502_s5, 4  ;;  %s243_s16 = int_to_ptr.vmem [resolvable:$true] %s242_s16  ;;  %s245_s19 = int_to_ptr.hbm [resolvable:$true] %s244_s19 }
  0x16   :  { %140 = vmatpush.msra.mxu1 %v91_v3  ;;  %v84_v5 = vld [vmem:[#allocation5] sm:$0xff]  ;;  %v87_v6 = vld [vmem:[#allocation5 + $0x18] sm:$0xff]  ;;  %v82_v7 = vld [vmem:[#allocation2] sm:$0xff] }
  0x17   :  { %118 = vmatpush.msra.mxu0 %v88_v1  ;;  %v85_v8 = vld [vmem:[#allocation5 + $0x8] sm:$0xff]  ;;  %v83_v9 = vld [vmem:[#allocation2 + $0x8] sm:$0xff]  ;;  %v484_v22 = vld [vmem:[#allocation7] sm:$0x3] }
  0x18   :  { %141 = vmatpush.msra.mxu1 %v89_v4  ;;  %v208_v10 = vld [vmem:[#allocation8 + $0x78] sm:$0xff]  ;;  %v207_v11 = vld [vmem:[#allocation8 + $0x70] sm:$0xff]  ;;  %v206_v12 = vld [vmem:[#allocation8 + $0x68] sm:$0xff]  ;;  %v94_v24 = vperm.slane %v484_v22, 0  ;;  %v95_v45 = vperm.slane %v484_v22, 1 }
  0x19   :  { %119 = vmatpush.msra.mxu0 %v86_v2  ;;  %213 = vmatpush.msra.mxu2 %v208_v10  ;;  %v205_v13 = vld [vmem:[#allocation8 + $0x60] sm:$0xff]  ;;  %v204_v14 = vld [vmem:[#allocation8 + $0x58] sm:$0xff]  ;;  %v203_v15 = vld [vmem:[#allocation8 + $0x50] sm:$0xff] }
  0x1a   :  { %142 = vmatpush.msra.mxu1 %v87_v6  ;;  %265 = vmatpush.msra.mxu3 %v208_v10  ;;  %v202_v16 = vld [vmem:[#allocation8 + $0x48] sm:$0xff]  ;;  %v201_v17 = vld [vmem:[#allocation8 + $0x40] sm:$0xff]  ;;  %v200_v18 = vld [vmem:[#allocation8 + $0x38] sm:$0xff] }
  0x1b   :  { %120 = vmatpush.msra.mxu0 %v84_v5  ;;  %214 = vmatpush.msra.mxu2 %v207_v11  ;;  %v199_v19 = vld [vmem:[#allocation8 + $0x30] sm:$0xff]  ;;  %v198_v20 = vld [vmem:[#allocation8 + $0x28] sm:$0xff]  ;;  %v197_v21 = vld [vmem:[#allocation8 + $0x20] sm:$0xff] }
  0x1c   :  { %259 = vmatmul.msk.f32.vlgmr.msra.gmra.mxu0 %vm98_vm0, %v82_v7  ;;  %143 = vmatpush.msra.mxu1 %v85_v8  ;;  %v196_v23 = vld [vmem:[#allocation8 + $0x18] sm:$0xff]  ;;  %v195_v25 = vld [vmem:[#allocation8 + $0x10] sm:$0xff]  ;;  %v194_v26 = vld [vmem:[#allocation8 + $0x8] sm:$0xff] }
  0x1d   :  { %261 = vmatmul.msk.f32.vlgmr.msra.gmra.mxu1 %vm98_vm0, %v82_v7  ;;  %266 = vmatpush.msra.mxu3 %v207_v11  ;;  %v193_v29 = vld [vmem:[#allocation8] sm:$0xff]  ;;  %v290_v3 = vld [vmem:[%s501_s4] ss:$0 sm:$0xff] }
  0x1e   :  { %215 = vmatpush.msra.mxu2 %v206_v12 }
  0x1f   :  { %267 = vmatpush.msra.mxu3 %v206_v12 }
  0x20   :  { %216 = vmatpush.msra.mxu2 %v205_v13 }
  0x21   :  { %268 = vmatpush.msra.mxu3 %v205_v13 }
  0x22   :  { %217 = vmatpush.msra.mxu2 %v204_v14 }
  0x23   :  { %269 = vmatpush.msra.mxu3 %v204_v14 }
  0x24   :  { %260 = vmatmul.msk.f32.gmra.mxu0 %vm98_vm0, %v83_v9  ;;  %218 = vmatpush.msra.mxu2 %v203_v15 }
  0x25   :  { %262 = vmatmul.msk.f32.gmra.mxu1 %vm98_vm0, %v83_v9  ;;  %270 = vmatpush.msra.mxu3 %v203_v15 }
  0x26   :  { %219 = vmatpush.msra.mxu2 %v202_v16 }
  0x27   :  { %271 = vmatpush.msra.mxu3 %v202_v16 }
  0x28   :  { %220 = vmatpush.msra.mxu2 %v201_v17 }
  0x29   :  { %272 = vmatpush.msra.mxu3 %v201_v17 }
  0x2a   :  { %221 = vmatpush.msra.mxu2 %v200_v18 }
  0x2b   :  { %273 = vmatpush.msra.mxu3 %v200_v18 }
  0x2c   :  { %222 = vmatpush.msra.mxu2 %v199_v19 }
  0x2d   :  { %274 = vmatpush.msra.mxu3 %v199_v19 }
  0x2e   :  { %223 = vmatpush.msra.mxu2 %v198_v20 }
  0x2f   :  { %275 = vmatpush.msra.mxu3 %v198_v20 }
  0x30   :  { %224 = vmatpush.msra.mxu2 %v197_v21 }
  0x31   :  { %276 = vmatpush.msra.mxu3 %v197_v21 }
  0x32   :  { %225 = vmatpush.msra.mxu2 %v196_v23 }
  0x33   :  { %277 = vmatpush.msra.mxu3 %v196_v23 }
  0x34   :  { %226 = vmatpush.msra.mxu2 %v195_v25 }
  0x35   :  { %278 = vmatpush.msra.mxu3 %v195_v25 }
  0x36   :  { %227 = vmatpush.msra.mxu2 %v194_v26 }
  0x37   :  { %279 = vmatpush.msra.mxu3 %v194_v26 }
  0x38   :  { %228 = vmatpush.msra.mxu2 %v193_v29 }
  0x39   :  { %280 = vmatpush.msra.mxu3 %v193_v29 }
  0x99   :  { %v122_v27 = vpop.f32.mrf.mxu0 }
  0x9a   :  { %v123_v28 = vadd.f32 %v122_v27, %v94_v24  ;;  %v145_v42 = vpop.f32.mrf.mxu1 }
  0x9b   :  { %v146_v51 = vadd.f32 %v145_v42, %v95_v45 }
  0x9c   :  { %v263_v30 = vmul.f32 -1.442695, %v123_v28 }
  0x9e   :  { %291 = vpow2.f32 %v263_v30 }
  0xa1   :  { %v125_v31 = vpop.f32.mrf.mxu0 }
  0xa2   :  { %v126_v32 = vadd.f32 %v125_v31, %v94_v24  ;;  %v148_v59 = vpop.f32.mrf.mxu1 }
  0xa3   :  { %v149_v63 = vadd.f32 %v148_v59, %v95_v45 }
  0xa4   :  { %v292_v33 = vpop.eup %291  ;;  %v264_v34 = vmul.f32 -1.442695, %v126_v32 }
  0xa5   :  { %v157_v35 = vadd.f32 1.0, %v292_v33 }
  0xa6   :  { %293 = vpow2.f32 %v264_v34 }
  0xa7   :  { %295 = vrcp.f32 %v157_v35  ;;  %v170_v41 = vand.u32 2147483648, %v157_v35  ;;  %v168_v44 = vand.u32 2147483647, %v157_v35  ;;  %vm164_vm2 = vweird.f32 %v157_v35 }
  0xa9   :  { %v171_v48 = vor.u32 1.1754944e-38, %v170_v41  ;;  %vm169_vm4 = vcmp.eq.f32.partialorder %v168_v44, 8.507059e+37 }
  0xac   :  { %v294_v36 = vpop.eup %293 }
  0xad   :  { %v296_v37 = vpop.eup %295  ;;  %v158_v38 = vadd.f32 1.0, %v294_v36 }
  0xae   :  { %v160_v39 = vmul.f32 %v296_v37, %v157_v35  ;;  %vm165_vm1 = vweird.f32 %v296_v37 }
  0xaf   :  { %297 = vrcp.f32 %v158_v38  ;;  %vm166_vm3 = vmor %vm164_vm2, %vm165_vm1  ;;  %v185_v55 = vand.u32 2147483648, %v158_v38  ;;  %v183_v57 = vand.u32 2147483647, %v158_v38  ;;  %vm179_vm6 = vweird.f32 %v158_v38 }
  0xb0   :  { %v161_v40 = vsub.f32 1.0, %v160_v39 }
  0xb1   :  { %v186_v61 = vor.u32 1.1754944e-38, %v185_v55  ;;  %vm184_vm8 = vcmp.eq.f32.partialorder %v183_v57, 8.507059e+37 }
  0xb2   :  { %v162_v43 = vmul.f32 %v296_v37, %v161_v40 }
  0xb4   :  { %v163_v46 = vadd.f32 %v296_v37, %v162_v43 }
  0xb5   :  { %v298_v47 = vpop.eup %297 }
  0xb6   :  { %v167_v49 = vsel %vm166_vm3, %v296_v37, %v163_v46  ;;  %v175_v50 = vmul.f32 %v298_v47, %v158_v38  ;;  %vm180_vm5 = vweird.f32 %v298_v47 }
  0xb7   :  { %v172_v52 = vsel %vm169_vm4, %v171_v48, %v167_v49  ;;  %vm181_vm7 = vmor %vm179_vm6, %vm180_vm5 }
  0xb8   :  { %v189_v53 = vmul.f32 %v172_v52, %v123_v28  ;;  %v176_v54 = vsub.f32 1.0, %v175_v50 }
  0xba   :  { %v177_v56 = vmul.f32 %v298_v47, %v176_v54  ;;  %v191_v58 = vmul.f32 %v189_v53, %v146_v51 }
  0xbc   :  { %v178_v60 = vadd.f32 %v298_v47, %v177_v56  ;;  %229 = vmatmul.f32.vlgmr.msra.gmra.mxu2 %v191_v58 }
  0xbe   :  { %v182_v62 = vsel %vm181_vm7, %v298_v47, %v178_v60 }
  0xbf   :  { %v187_v0 = vsel %vm184_vm8, %v186_v61, %v182_v62 }
  0xc0   :  { %v190_v1 = vmul.f32 %v187_v0, %v126_v32 }
  0xc2   :  { %v192_v2 = vmul.f32 %v190_v1, %v149_v63 }
  0xc4   :  { %232 = vmatmul.f32.vlgmr.msra.gmra.mxu3 %v192_v2 }
 0x13f   :  { %v230_v4 = vpop.f32.mrf.mxu2 }
 0x140   :  { %v231_v5 = vadd.f32 %v290_v3, %v230_v4 }
 0x142   :  { %236 = vst [vmem:[#allocation10] sm:$0xff] %v231_v5 }
 0x147   :  { %v233_v6 = vpop.f32.mrf.mxu3 }
 0x148   :  { %v234_v7 = vadd.f32 %v290_v3, %v233_v6 }
 0x14a   :  { %237 = vst [vmem:[#allocation10 + $0x8] sm:$0xff] %v234_v7 }
 0x14b   :  { %250 = dma.vmem_to_hbm [thread:$0]  %s243_s16, 256, %s245_s19, [#allocation4], %s431_s30, %s431_s30, %s432_s6  }
 0x14c   :  { %425 = dma.done.wait [#allocation4], 256  }
 0x14d   :  { %426 = vsyncadd [#allocation4], 4294967040 }
 0x14e   :  { %255 = vsyncpa [#allocation3], 1 }
 0x14f   :  { %256 = vsyncpa [#allocation6], 1 }
 0x150   :  { %257 = vsyncpa [#allocation9], 1 }
 0x151   :  { %258 = vsyncpa [#allocation4], 1 }

</bundles_post_ra>
